<compile_context>
chip_gen: v5e
topology: v5e:2x2
jax: 0.10.0
libtpu: 0.0.40
codegen_flags: <defaults>
</compile_context>

<pallas_src>
import jax
import jax.numpy as jnp
from jax.experimental import pallas as pl
from jax.experimental.pallas import tpu as pltpu

EMBED_DIM = 128        # config.embed_dim (chosen lane-aligned)
DIFF_TEXT_DIM = 16     # self.diff_text_dim
DIFF_TEXT_PATCH = 64   # self.diff_text_patch
NUM_FRAMES = 12        # config.num_frames (diff_proj is built in __init__ but unused in forward)

# 2 double-buffered input tiles of (256, 64, 128) f32 = 16 MiB total: fits v7x's 32 MiB
# scoped-VMEM default with room to spare (vmem_limit raised below to also cover v5e's 16 MiB).
MAX_BATCH_BLOCK = 256


def _diffusion_kernel(x_ref, wsum_ref, wt_t_ref, ws_t_ref, bias_ref, o_ref):
    """One batch tile: x [TB, P, E] -> out [TB, E]."""
    x = x_ref[...]                                   # [TB, P, E] f32
    w = wsum_ref[...]                                # [1, P]     linear_sims_sum.weight

    # linear_sims_sum's weighted reduction over the patch axis, hoisted in front of the
    # linear chain (exact while run_diffusion is identity / linear).  VPU multiply +
    # sublane reduce; hides under the pipelined HBM load of x.
    xr = jnp.sum(x * w[0][None, :, None], axis=1)    # [TB, E]

    # linear_text (weight pre-transposed to [E, Dt]; its bias is folded into bias_ref)
    h = jnp.dot(xr, wt_t_ref[...], preferred_element_type=jnp.float32)    # [TB, Dt]

    # run_diffusion (stage == 'Test'): external module, not defined in this file.
    # TODO(synk): run_diffusion() has no in-module definition; identity passthrough used.
    #             The patch-reduction hoist above is only exact while this stays identity
    #             (or linear over the patch axis); revert to the un-hoisted order otherwise.
    sims = h

    # linear_sims (weight pre-transposed to [Dt, E]; its bias is folded into bias_ref)
    s = jnp.dot(sims, ws_t_ref[...], preferred_element_type=jnp.float32)  # [TB, E]

    # bias_ref = sum(wsum) * (bt @ Ws^T + bs) + bsum  (precomputed exactly in the wrapper)
    o_ref[...] = (s + bias_ref[...]).astype(o_ref.dtype)


def diffusion_forward(video_embeds, params, *, tb=None):
    """video_embeds: [B, DIFF_TEXT_PATCH, EMBED_DIM] f32 -> [B, EMBED_DIM] f32 (stage='Test')."""
    B, P, E = video_embeds.shape
    wt, bt, ws, bs, wsum, bsum = params
    dt = wt.shape[0]

    # ---- one-time wrapper-side layout prep (tiny) ----
    wt_t = wt.T                                                     # [E, Dt]
    ws_t = ws.T                                                     # [Dt, E]
    # Fold all three biases into a single [1, E] vector (elementwise ops -> exact f32):
    #   out = xr @ Wt^T @ Ws^T + sum(wsum) * (bt @ Ws^T + bs) + bsum
    wsum_total = jnp.sum(wsum)
    bias_lin = jnp.sum(bt.reshape(-1, 1) * ws_t, axis=0) + bs.reshape(-1)       # [E]
    bias_fold = (wsum_total * bias_lin + bsum.reshape(())).reshape(1, E)        # [1, E]
    bias_fold = bias_fold.astype(jnp.float32)

    # ---- batch tiling ----
    TB = (B if B <= MAX_BATCH_BLOCK else MAX_BATCH_BLOCK) if tb is None else tb
    Bp = pl.cdiv(B, TB) * TB
    # Output block (TB, E): TB must be sublane-friendly unless it spans the whole batch.
    assert TB == Bp or TB % 8 == 0, "tb must be a multiple of 8 when it tiles the batch axis"
    x = video_embeds
    if Bp != B:
        x = jnp.pad(x, ((0, Bp - B), (0, 0), (0, 0)))

    out = pl.pallas_call(
        _diffusion_kernel,
        out_shape=jax.ShapeDtypeStruct((Bp, E), jnp.float32),
        grid=(Bp // TB,),
        in_specs=[
            pl.BlockSpec((TB, P, E), lambda i: (i, 0, 0)),   # streamed, double-buffered
            pl.BlockSpec((1, P),     lambda i: (0, 0)),      # small constants, fixed index
            pl.BlockSpec((E, dt),    lambda i: (0, 0)),
            pl.BlockSpec((dt, E),    lambda i: (0, 0)),
            pl.BlockSpec((1, E),     lambda i: (0, 0)),
        ],
        out_specs=pl.BlockSpec((TB, E), lambda i: (i, 0)),
        compiler_params=pltpu.CompilerParams(
            dimension_semantics=("parallel",),               # shard batch grid across TCs
            vmem_limit_bytes=64 * 1024 * 1024,               # headroom for TB=256 on v5e
        ),
        cost_estimate=pl.CostEstimate(
            flops=2 * Bp * P * E + 4 * Bp * E * dt,
            transcendentals=0,
            bytes_accessed=4 * (Bp * P * E + Bp * E + 2 * E * dt + P + E),
        ),
    )(x, wsum, wt_t, ws_t, bias_fold)
    return out[:B]


def init_params():
    """Deterministic init mirroring _init_parameters(): nn.init.eye_ on weights, zero biases."""
    wt = jnp.eye(DIFF_TEXT_DIM, EMBED_DIM, dtype=jnp.float32)      # linear_text.weight     [16, 128]
    bt = jnp.zeros((DIFF_TEXT_DIM,), dtype=jnp.float32)            # linear_text.bias       [16]
    ws = jnp.eye(EMBED_DIM, DIFF_TEXT_DIM, dtype=jnp.float32)      # linear_sims.weight     [128, 16]
    bs = jnp.zeros((EMBED_DIM,), dtype=jnp.float32)                # linear_sims.bias       [128]
    wsum = jnp.eye(1, DIFF_TEXT_PATCH, dtype=jnp.float32)          # linear_sims_sum.weight [1, 64]
    bsum = jnp.zeros((1,), dtype=jnp.float32)                      # linear_sims_sum.bias   [1]
    # diff_proj (Linear(num_frames, embed_dim)) exists in __init__ but is never used in forward.
    return (wt, bt, ws, bs, wsum, bsum)


def reference_forward(video_embeds, params):
    """Pure-JAX reference in the ORIGINAL operation order (validates the in-kernel reorder)."""
    wt, bt, ws, bs, wsum, bsum = params
    hi = jax.lax.Precision.HIGHEST
    h = jnp.einsum('bpe,de->bpd', video_embeds, wt, precision=hi) + bt   # linear_text
    s = jnp.einsum('bpd,ed->bpe', h, ws, precision=hi) + bs              # (identity) + linear_sims
    out = jnp.einsum('bpe,p->be', s, wsum[0], precision=hi) + bsum[0]    # permute + sum-linear + squeeze
    return out


if __name__ == "__main__":
    key = jax.random.PRNGKey(0)
    kx, kx2, k1, k2, k3, k4, k5, k6 = jax.random.split(key, 8)

    # --- module-faithful check: eye/zero init (as _init_parameters), B = 2, single grid step ---
    B = 2
    video_embeds = jax.random.normal(kx, (B, DIFF_TEXT_PATCH, EMBED_DIM), dtype=jnp.float32)
    # diff_data is only consumed by the external run_diffusion(); unused here.
    params = init_params()
    out = jax.block_until_ready(diffusion_forward(video_embeds, params))
    ref = reference_forward(video_embeds, params)
    assert out.shape == (B, EMBED_DIM), out.shape
    assert jnp.allclose(out, ref, atol=1e-5, rtol=1e-5), "mismatch vs JAX reference (eye init)"

    # --- general check: random params, multi-step grid (tb=8) + batch padding (B=12 -> 16) ---
    B2 = 12
    x2 = jax.random.normal(kx2, (B2, DIFF_TEXT_PATCH, EMBED_DIM), dtype=jnp.float32)
    params_r = (
        jax.random.normal(k1, (DIFF_TEXT_DIM, EMBED_DIM), jnp.float32) / jnp.sqrt(EMBED_DIM),
        jax.random.normal(k2, (DIFF_TEXT_DIM,), jnp.float32) * 0.1,
        jax.random.normal(k3, (EMBED_DIM, DIFF_TEXT_DIM), jnp.float32) / jnp.sqrt(DIFF_TEXT_DIM),
        jax.random.normal(k4, (EMBED_DIM,), jnp.float32) * 0.1,
        jax.random.normal(k5, (1, DIFF_TEXT_PATCH), jnp.float32) / jnp.sqrt(DIFF_TEXT_PATCH),
        jax.random.normal(k6, (1,), jnp.float32) * 0.1,
    )
    out2 = jax.block_until_ready(diffusion_forward(x2, params_r, tb=8))
    ref2 = reference_forward(x2, params_r)
    assert out2.shape == (B2, EMBED_DIM), out2.shape
    assert jnp.allclose(out2, ref2, atol=1e-4, rtol=1e-4), "mismatch vs JAX reference (random params)"

    print("KERNEL_OK")
</pallas_src>

<mosaic_0001>
module attributes {stable_mosaic.version = 11 : i64} {
  func.func @_diffusion_kernel(%arg0: i32, %arg1: memref<2x64x128xf32, #tpu.memory_space<vmem>>, %arg2: memref<1x64xf32, #tpu.memory_space<vmem>>, %arg3: memref<128x16xf32, #tpu.memory_space<vmem>>, %arg4: memref<16x128xf32, #tpu.memory_space<vmem>>, %arg5: memref<1x128xf32, #tpu.memory_space<vmem>>, %arg6: memref<2x128xf32, #tpu.memory_space<vmem>>) attributes {dimension_semantics = [#tpu.dimension_semantics<parallel>], iteration_bounds = array<i64: 1>, scalar_prefetch = 0 : i64, scratch_operands = 0 : i64, tpu.core_type = #tpu.core_type<tc>, window_params = [{transform_indices = @transform_0, window_bounds = array<i64: 2, 64, 128>}, {pipeline_mode = #tpu.pipeline_mode<synchronous>, transform_indices = @transform_1, window_bounds = array<i64: 1, 64>}, {pipeline_mode = #tpu.pipeline_mode<synchronous>, transform_indices = @transform_2, window_bounds = array<i64: 128, 16>}, {pipeline_mode = #tpu.pipeline_mode<synchronous>, transform_indices = @transform_3, window_bounds = array<i64: 16, 128>}, {pipeline_mode = #tpu.pipeline_mode<synchronous>, transform_indices = @transform_4, window_bounds = array<i64: 1, 128>}, {transform_indices = @transform_5, window_bounds = array<i64: 2, 128>}]} {
    %c0 = arith.constant 0 : index
    %c0_0 = arith.constant 0 : index
    %c0_1 = arith.constant 0 : index
    %0 = vector.load %arg1[%c0, %c0_0, %c0_1] : memref<2x64x128xf32, #tpu.memory_space<vmem>>, vector<2x64x128xf32>
    %c0_2 = arith.constant 0 : index
    %c0_3 = arith.constant 0 : index
    %1 = vector.load %arg2[%c0_2, %c0_3] : memref<1x64xf32, #tpu.memory_space<vmem>>, vector<1x64xf32>
    %2 = vector.shape_cast %1 : vector<1x64xf32> to vector<64xf32>
    %3 = vector.shape_cast %2 : vector<64xf32> to vector<1x64x1xf32>
    %4 = vector.broadcast %3 : vector<1x64x1xf32> to vector<2x64x128xf32>
    %5 = arith.mulf %0, %4 : vector<2x64x128xf32>
    %cst = arith.constant dense<0.000000e+00> : vector<2x128xf32>
    %6 = vector.multi_reduction <add>, %5, %cst [1] : vector<2x64x128xf32> to vector<2x128xf32>
    %c0_4 = arith.constant 0 : index
    %c0_5 = arith.constant 0 : index
    %7 = vector.load %arg3[%c0_4, %c0_5] : memref<128x16xf32, #tpu.memory_space<vmem>>, vector<128x16xf32>
    %cst_6 = arith.constant dense<0.000000e+00> : vector<2x16xf32>
    %8 = tpu.matmul %6, %7, %cst_6 {dimension_numbers = #tpu.dot_dimension_numbers<[1], [0], [0], [1], [0, 0, 1, 1], [], []>} : vector<2x128xf32>, vector<128x16xf32>, vector<2x16xf32> -> vector<2x16xf32>
    %c0_7 = arith.constant 0 : index
    %c0_8 = arith.constant 0 : index
    %9 = vector.load %arg4[%c0_7, %c0_8] : memref<16x128xf32, #tpu.memory_space<vmem>>, vector<16x128xf32>
    %cst_9 = arith.constant dense<0.000000e+00> : vector<2x128xf32>
    %10 = tpu.matmul %8, %9, %cst_9 {dimension_numbers = #tpu.dot_dimension_numbers<[1], [0], [0], [1], [0, 0, 1, 1], [], []>} : vector<2x16xf32>, vector<16x128xf32>, vector<2x128xf32> -> vector<2x128xf32>
    %c0_10 = arith.constant 0 : index
    %c0_11 = arith.constant 0 : index
    %11 = vector.load %arg5[%c0_10, %c0_11] : memref<1x128xf32, #tpu.memory_space<vmem>>, vector<1x128xf32>
    %12 = vector.broadcast %11 : vector<1x128xf32> to vector<2x128xf32>
    %13 = arith.addf %10, %12 : vector<2x128xf32>
    %c0_12 = arith.constant 0 : index
    %c0_13 = arith.constant 0 : index
    %14 = vector.load %arg6[%c0_12, %c0_13] : memref<2x128xf32, #tpu.memory_space<vmem>>, vector<2x128xf32>
    tpu.vector_store %arg6[%c0_12, %c0_13], %13 {strides = array<i32>} : memref<2x128xf32, #tpu.memory_space<vmem>>, vector<2x128xf32>,
    return
  }
  func.func @transform_0(%arg0: i32) -> (i32, i32, i32) {
    %c0_i32 = arith.constant 0 : i32
    %c0_i32_0 = arith.constant 0 : i32
    %c0_i32_1 = arith.constant 0 : i32
    return %arg0, %c0_i32, %c0_i32_0 : i32, i32, i32
  }
  func.func @transform_1(%arg0: i32) -> (i32, i32) {
    %c0_i32 = arith.constant 0 : i32
    %c0_i32_0 = arith.constant 0 : i32
    %c0_i32_1 = arith.constant 0 : i32
    return %c0_i32, %c0_i32_0 : i32, i32
  }
  func.func @transform_2(%arg0: i32) -> (i32, i32) {
    %c0_i32 = arith.constant 0 : i32
    %c0_i32_0 = arith.constant 0 : i32
    %c0_i32_1 = arith.constant 0 : i32
    return %c0_i32, %c0_i32_0 : i32, i32
  }
  func.func @transform_3(%arg0: i32) -> (i32, i32) {
    %c0_i32 = arith.constant 0 : i32
    %c0_i32_0 = arith.constant 0 : i32
    %c0_i32_1 = arith.constant 0 : i32
    return %c0_i32, %c0_i32_0 : i32, i32
  }
  func.func @transform_4(%arg0: i32) -> (i32, i32) {
    %c0_i32 = arith.constant 0 : i32
    %c0_i32_0 = arith.constant 0 : i32
    %c0_i32_1 = arith.constant 0 : i32
    return %c0_i32, %c0_i32_0 : i32, i32
  }
  func.func @transform_5(%arg0: i32) -> (i32, i32) {
    %c0_i32 = arith.constant 0 : i32
    %c0_i32_0 = arith.constant 0 : i32
    return %arg0, %c0_i32 : i32, i32
  }
}

</mosaic_0001>

<bundles_post_ra>
// kernel: tpu_custom_call.1
= control target key start
LH: loop header
LB: loop body
LE: loop exit
PB: predicated region body
PF: predicated region fallthrough
CT: control target
= control target key end

     0   :  { %10 = vsyncpa [#allocation3], 0  ;;  %s441_s0 = inlined_call_operand.vmem [shape: f32[2,64,128], index: 0, kind: input, shape index: {}]   ;;  %s442_s1 = inlined_call_operand.hbm [shape: f32[1,64], index: 1, kind: input, shape index: {}]   ;;  %s443_s2 = inlined_call_operand.vmem [shape: f32[128,16], index: 2, kind: input, shape index: {}]   ;;  %s444_s3 = inlined_call_operand.vmem [shape: f32[16,128], index: 3, kind: input, shape index: {}]   ;;  %s445_s4 = inlined_call_operand.vmem [shape: f32[1,128], index: 4, kind: input, shape index: {}]   ;;  %s446_s5 = inlined_call_operand.hbm [shape: f32[2,128], index: 5, kind: output, shape index: {}]  }
   0x1   :  { %11 = vsyncpa [#allocation4], 0  ;;  %s19_s20 = sshll.u32 %s442_s1, 4  ;;  %s298_s21 = smov [#allocation2]   ;;  %s20_s20 = int_to_ptr.hbm [resolvable:$true] %s19_s20 }
   0x2   :  { %s21_s22 = sshll.u32 %s298_s21, 4  ;;  %s22_s22 = int_to_ptr.vmem [resolvable:$true] %s21_s22 }
   0x3   :  { %24 = dma.hbm_to_vmem [thread:$0]  %s20_s20, 16, %s22_s22, [#allocation3]  }
   0x4   :  { %294 = dma.done.wait [#allocation3], 16  }
   0x5   :  { %295 = vsyncadd [#allocation3], 4294967280  ;;  %v53_v0 = vlaneseq  ;;  %v244_v4 = vld [vmem:[#allocation2] ss:$0 sm:$0xff]  ;;  %v158_v10 = vld [vmem:[%s443_s2 + $0x78] sm:$0xff]  ;;  %vm161_vm0 = vcmask 1041409  }
   0x6   :  { %164 = vmatpush.msra.mxu0 %v158_v10  ;;  %v157_v11 = vld [vmem:[%s443_s2 + $0x70] sm:$0xff]  ;;  %v156_v12 = vld [vmem:[%s443_s2 + $0x68] sm:$0xff]  ;;  %v155_v13 = vld [vmem:[%s443_s2 + $0x60] sm:$0xff]  ;;  %vm190_vm1 = vcmask 130048   ;;  %s299_s13 = smov [#allocation5]   ;;  %s222_s17 = sshll.u32 %s446_s5, 4  ;;  %s223_s17 = int_to_ptr.hbm [resolvable:$true] %s222_s17 }
   0x7   :  { %v54_v1 = vshrl.u32 %v53_v0, 7  ;;  %v154_v14 = vld [vmem:[%s443_s2 + $0x58] sm:$0xff]  ;;  %v153_v15 = vld [vmem:[%s443_s2 + $0x50] sm:$0xff]  ;;  %v152_v16 = vld [vmem:[%s443_s2 + $0x48] sm:$0xff]  ;;  %s220_s14 = sshll.u32 %s299_s13, 4  ;;  %s221_s14 = int_to_ptr.vmem [resolvable:$true] %s220_s14 }
   0x8   :  { %165 = vmatpush.msra.mxu0 %v157_v11  ;;  %v151_v17 = vld [vmem:[%s443_s2 + $0x40] sm:$0xff]  ;;  %v150_v19 = vld [vmem:[%s443_s2 + $0x38] sm:$0xff]  ;;  %v149_v20 = vld [vmem:[%s443_s2 + $0x30] sm:$0xff] }
   0x9   :  { %235 = vset.pattern.permute.xlu0 %v54_v1  ;;  %v67_v2 = vadd.s32 16, %v54_v1  ;;  %v79_v3 = vadd.s32 32, %v54_v1  ;;  %v61_v5 = vadd.s32 8, %v54_v1  ;;  %v73_v6 = vadd.s32 24, %v54_v1  ;;  %v148_v21 = vld [vmem:[%s443_s2 + $0x28] sm:$0xff]  ;;  %v147_v22 = vld [vmem:[%s443_s2 + $0x20] sm:$0xff] }
   0xa   :  { %v85_v7 = vadd.s32 40, %v54_v1  ;;  %v91_v8 = vadd.s32 48, %v54_v1  ;;  %v97_v9 = vadd.s32 56, %v54_v1  ;;  %166 = vmatpush.msra.mxu0 %v156_v12  ;;  %v35_v23 = vld [vmem:[%s441_s0] sm:$0xff]  ;;  %v36_v26 = vld [vmem:[%s441_s0 + $0x8] sm:$0xff]  ;;  %v146_v28 = vld [vmem:[%s443_s2 + $0x18] sm:$0xff] }
   0xb   :  { %237 = vset.pattern.permute.xlu1 %v67_v2  ;;  %239 = vset.pattern.permute.xlu2 %v79_v3  ;;  %v43_v24 = vld [vmem:[%s441_s0 + $0x40] sm:$0xff]  ;;  %v44_v27 = vld [vmem:[%s441_s0 + $0x48] sm:$0xff]  ;;  %v145_v30 = vld [vmem:[%s443_s2 + $0x10] sm:$0xff] }
   0xc   :  { %167 = vmatpush.msra.mxu0 %v155_v13  ;;  %v144_v32 = vld [vmem:[%s443_s2 + $0x8] sm:$0xff]  ;;  %v37_v37 = vld [vmem:[%s441_s0 + $0x10] sm:$0xff]  ;;  %v143_v39 = vld [vmem:[%s443_s2] sm:$0xff] }
   0xd   :  { %v45_v38 = vld [vmem:[%s441_s0 + $0x50] sm:$0xff]  ;;  %v38_v45 = vld [vmem:[%s441_s0 + $0x18] sm:$0xff]  ;;  %v185_v47 = vld [vmem:[%s444_s3 + $0x8] sm:$0xff] }
   0xe   :  { %168 = vmatpush.msra.mxu0 %v154_v14  ;;  %v46_v46 = vld [vmem:[%s441_s0 + $0x58] sm:$0xff]  ;;  %208 = vmatpush.msra.mxu1 %v185_v47  ;;  %v39_v53 = vld [vmem:[%s441_s0 + $0x20] sm:$0xff]  ;;  %v40_v59 = vld [vmem:[%s441_s0 + $0x28] sm:$0xff] }
   0xf   :  { %v47_v54 = vld [vmem:[%s441_s0 + $0x60] sm:$0xff]  ;;  %v48_v60 = vld [vmem:[%s441_s0 + $0x68] sm:$0xff]  ;;  %v42_v0 = vld [vmem:[%s441_s0 + $0x38] sm:$0xff] }
  0x10   :  { %169 = vmatpush.msra.mxu0 %v153_v15  ;;  %v50_v1 = vld [vmem:[%s441_s0 + $0x78] sm:$0xff]  ;;  %v41_v2 = vld [vmem:[%s441_s0 + $0x30] sm:$0xff] }
  0x11   :  { %57 = vperm.xlu0 %235, %v244_v4   ;;  %v49_v3 = vld [vmem:[%s441_s0 + $0x70] sm:$0xff] }
  0x12   :  { %170 = vmatpush.msra.mxu0 %v152_v16 }
  0x13   :  { %69 = vperm.xlu1 %237, %v244_v4   ;;  %81 = vperm.xlu2 %239, %v244_v4  }
  0x14   :  { %171 = vmatpush.msra.mxu0 %v151_v17 }
  0x16   :  { %172 = vmatpush.msra.mxu0 %v150_v19 }
  0x18   :  { %173 = vmatpush.msra.mxu0 %v149_v20 }
  0x19   :  { %236 = vset.pattern.permute.xlu0 %v61_v5 }
  0x1a   :  { %174 = vmatpush.msra.mxu0 %v148_v21 }
  0x1b   :  { %238 = vset.pattern.permute.xlu1 %v73_v6  ;;  %240 = vset.pattern.permute.xlu2 %v85_v7 }
  0x1c   :  { %175 = vmatpush.msra.mxu0 %v147_v22 }
  0x1e   :  { %176 = vmatpush.msra.mxu0 %v146_v28 }
  0x20   :  { %177 = vmatpush.msra.mxu0 %v145_v30  ;;  %v184_v30 = vld [vmem:[%s444_s3] sm:$0xff] }
  0x21   :  { %63 = vperm.xlu0 %236, %v244_v4   ;;  %209 = vmatpush.msra.mxu1 %v184_v30 }
  0x22   :  { %178 = vmatpush.msra.mxu0 %v144_v32  ;;  %v245_v32 = vld [vmem:[%s445_s4] ss:$0 sm:$0xff] }
  0x23   :  { %75 = vperm.xlu1 %238, %v244_v4   ;;  %87 = vperm.xlu2 %240, %v244_v4  }
  0x24   :  { %179 = vmatpush.msra.mxu0 %v143_v39 }
  0x29   :  { %243 = vset.pattern.permute.xlu0 %v97_v9 }
  0x2b   :  { %241 = vset.pattern.permute.xlu1 %v91_v8  ;;  %242 = vset.pattern.permute.xlu2 %v97_v9 }
  0x33   :  { %93 = vperm.xlu1 %241, %v244_v4   ;;  %99 = vperm.xlu2 %242, %v244_v4  }
  0x6d   :  { %v82_v29 = vpop.permute.xlu2 %81 }
  0x6e   :  { %v105_v57 = vmul.f32 %v82_v29, %v39_v53  ;;  %v113_v58 = vmul.f32 %v82_v29, %v47_v54 }
  0x7d   :  { %v88_v50 = vpop.permute.xlu2 %87 }
  0x7e   :  { %v106_v4 = vmul.f32 %v88_v50, %v40_v59  ;;  %v114_v5 = vmul.f32 %v88_v50, %v48_v60 }
  0x83   :  { %v58_v18 = vpop.permute.xlu0 %57 }
  0x84   :  { %v101_v33 = vmul.f32 %v58_v18, %v35_v23  ;;  %v109_v34 = vmul.f32 %v58_v18, %v43_v24 }
  0x85   :  { %v70_v25 = vpop.permute.xlu1 %69 }
  0x86   :  { %v103_v42 = vmul.f32 %v70_v25, %v37_v37  ;;  %v111_v43 = vmul.f32 %v70_v25, %v45_v38 }
  0x8d   :  { %v100_v63 = vpop.permute.xlu2 %99 }
  0x8e   :  { %v108_v7 = vmul.f32 %v100_v63, %v42_v0  ;;  %v116_v8 = vmul.f32 %v100_v63, %v50_v1 }
  0x93   :  { %v64_v31 = vpop.permute.xlu0 %63 }
  0x94   :  { %v102_v35 = vmul.f32 %v64_v31, %v36_v26  ;;  %v110_v36 = vmul.f32 %v64_v31, %v44_v27 }
  0x95   :  { %v76_v44 = vpop.permute.xlu1 %75 }
  0x96   :  { %v117_v40 = vadd.f32 %v102_v35, %v101_v33  ;;  %v130_v41 = vadd.f32 %v110_v36, %v109_v34  ;;  %v104_v51 = vmul.f32 %v76_v44, %v38_v45  ;;  %v112_v52 = vmul.f32 %v76_v44, %v46_v46 }
  0x98   :  { %v118_v48 = vadd.f32 %v117_v40, %v103_v42  ;;  %v131_v49 = vadd.f32 %v130_v41, %v111_v43 }
  0x9a   :  { %v119_v55 = vadd.f32 %v118_v48, %v104_v51  ;;  %v132_v56 = vadd.f32 %v131_v49, %v112_v52 }
  0x9c   :  { %v120_v61 = vadd.f32 %v119_v55, %v105_v57  ;;  %v133_v62 = vadd.f32 %v132_v56, %v113_v58 }
  0x9e   :  { %v121_v9 = vadd.f32 %v120_v61, %v106_v4  ;;  %v134_v10 = vadd.f32 %v133_v62, %v114_v5 }
  0xa5   :  { %v94_v6 = vpop.permute.xlu1 %93 }
  0xa6   :  { %v107_v11 = vmul.f32 %v94_v6, %v41_v2  ;;  %v115_v12 = vmul.f32 %v94_v6, %v49_v3 }
  0xa8   :  { %v122_v13 = vadd.f32 %v121_v9, %v107_v11  ;;  %v135_v14 = vadd.f32 %v134_v10, %v115_v12 }
  0xaa   :  { %v123_v15 = vadd.f32 %v122_v13, %v108_v7  ;;  %v136_v16 = vadd.f32 %v135_v14, %v116_v8 }
  0xac   :  { %v124_v17 = vrot.slane %v123_v15, 4  ;;  %v137_v18 = vrot.slane %v136_v16, 4 }
  0xae   :  { %v125_v19 = vadd.f32 %v124_v17, %v123_v15  ;;  %v138_v20 = vadd.f32 %v137_v18, %v136_v16 }
  0xb0   :  { %v126_v21 = vrot.slane %v125_v19, 2  ;;  %v139_v22 = vrot.slane %v138_v20, 2 }
  0xb2   :  { %v127_v23 = vadd.f32 %v126_v21, %v125_v19  ;;  %v140_v24 = vadd.f32 %v139_v22, %v138_v20 }
  0xb4   :  { %v128_v25 = vrot.slane %v127_v23, 1  ;;  %v141_v26 = vrot.slane %v140_v24, 1 }
  0xb6   :  { %v129_v27 = vadd.f32 %v128_v25, %v127_v23  ;;  %v142_v28 = vadd.f32 %v141_v26, %v140_v24 }
  0xb8   :  { %v162_v29 = vsel %vm161_vm0, %v142_v28, %v129_v27 }
  0xb9   :  { %180 = vmatmul.f32.vlgmr.msra.gmra.mxu0 %v162_v29 }
 0x136   :  { %v181_v31 = vpop.f32.mrf.mxu0 }
 0x137   :  { %232 = vmatmul.msk.f32.vlgmr.msra.gmra.mxu1 %vm190_vm1, %v181_v31 }
 0x1b4   :  { %v211_v33 = vpop.f32.mrf.mxu1 }
 0x1b5   :  { %v212_v34 = vadd.f32 %v245_v32, %v211_v33 }
 0x1b7   :  { %214 = vst [vmem:[#allocation5] sm:$0x3] %v212_v34 }
 0x1b8   :  { %225 = dma.vmem_to_hbm [thread:$0]  %s221_s14, 32, %s223_s17, [#allocation4]  }
 0x1b9   :  { %296 = dma.done.wait [#allocation4], 32  }
 0x1ba   :  { %297 = vsyncadd [#allocation4], 4294967264 }
 0x1bb   :  { %230 = vsyncpa [#allocation3], 1 }
 0x1bc   :  { %231 = vsyncpa [#allocation4], 1 }

</bundles_post_ra>
